<compile_context>
chip_gen: v7x
topology: tpu7x:2x2x1
jax: 0.10.0
libtpu: 0.0.40
codegen_flags: <defaults>
</compile_context>

<pallas_src>
import functools
import math

import jax
import jax.numpy as jnp
from jax.experimental import pallas as pl
from jax.experimental.pallas import tpu as pltpu


# ----------------------------- Pallas kernel ------------------------------- #
def self_inf_s1_kernel(x_ref, lab_ref, wp_ref, wvo_ref, wc_ref, vec_ref,
                       out_ref, *, ln_eps, num_classes):
    x = x_ref[...]                                   # (TB, D_in)
    vec = vec_ref[...]                               # (8, L) packed vectors
    b_proj, b_vo = vec[0:1, :], vec[1:2, :]
    ln_g, ln_b = vec[2:3, :], vec[3:4, :]

    def silu(h):
        return h * jax.nn.sigmoid(h)

    # --- projection: Linear + SiLU (+ Dropout == identity at inference) ----
    h = silu(jnp.dot(x, wp_ref[...],
                     preferred_element_type=jnp.float32) + b_proj)      # (TB, L)

    # --- multi-head self-attention, specialized for S == 1 -----------------
    # softmax over a single key is exactly 1.0, so ctx == V; the fused
    # W_vo = W_v @ W_o (precomputed in the wrapper) gives the MHA output.
    mha = jnp.dot(h, wvo_ref[...],
                  preferred_element_type=jnp.float32) + b_vo            # (TB, L)

    # --- classifier: LayerNorm -> SiLU -> Linear(no bias, L-padded cols) ---
    mu = jnp.mean(mha, axis=-1, keepdims=True)
    var = jnp.mean((mha - mu) ** 2, axis=-1, keepdims=True)
    ln = (mha - mu) * jax.lax.rsqrt(var + ln_eps) * ln_g + ln_b
    logits = jnp.dot(silu(ln), wc_ref[...],
                     preferred_element_type=jnp.float32)                # (TB, L)

    # --- fused per-sample epilogue over the first `num_classes` lanes ------
    tb, L = logits.shape
    lane = jax.lax.broadcasted_iota(jnp.int32, (tb, L), 1)
    valid = lane < num_classes
    lm = jnp.where(valid, logits, jnp.float32(-1e30))
    m = jnp.max(lm, axis=-1, keepdims=True)
    z = lm - m
    e = jnp.exp(z)
    s = jnp.sum(e, axis=-1, keepdims=True)
    probs = jnp.where(valid, e / s, 0.0)                                 # (TB, L)
    logp = z - jnp.log(s)

    labels = lab_ref[...]                                                # (TB, 1)
    onehot = lane == labels
    nll = -jnp.sum(jnp.where(onehot, logp, 0.0), axis=-1, keepdims=True)  # (TB, 1)

    is_max = jnp.logical_and(valid, lm >= m)
    pred = jnp.min(jnp.where(is_max, lane, L),
                   axis=-1, keepdims=True).astype(jnp.float32)           # (TB, 1)

    misc = jnp.where(lane == 0, nll, 0.0) + jnp.where(lane == 1, pred, 0.0)

    # single lane-dense store: [emb | logits | probs | misc] == (TB, 4*L)
    out_ref[...] = jnp.concatenate([mha, logits, probs, misc], axis=-1)


# ------------------------------ Wrapper ------------------------------------ #
def fuse_params(params):
    """Precompute fused / packed operands for the kernel (done once)."""
    L = params["w_proj"].shape[1]
    C = params["w_cls"].shape[1]
    assert C <= L, "classifier width must fit inside the latent lane block"
    w_vo = params["w_v"] @ params["w_o"]
    b_vo = params["b_v"] @ params["w_o"] + params["b_o"]
    vecs = jnp.zeros((8, L), jnp.float32)
    vecs = vecs.at[0:1].set(params["b_proj"])
    vecs = vecs.at[1:2].set(b_vo)
    vecs = vecs.at[2:3].set(params["ln_g"])
    vecs = vecs.at[3:4].set(params["ln_b"])
    w_cls_pad = jnp.pad(params["w_cls"], ((0, 0), (0, L - C)))
    return {"w_proj": params["w_proj"], "w_vo": w_vo,
            "w_cls_pad": w_cls_pad, "vecs": vecs,
            "latent": int(L), "num_classes": int(C)}


def self_inf_pallas(x2d, labels, fp, *, ln_eps=1e-5,
                    row_tile=4096, split_threshold=256):
    """x2d: (B, D_in) informed features (S==1 folded into rows).
    Returns a (b_pad, 4*L) slab: [emb | logits | probs | nll,pred,...]."""
    B, D_in = x2d.shape
    L, C = fp["latent"], fp["num_classes"]
    W_slab = 4 * L

    if B <= split_threshold:
        tb, b_pad, n_tiles = B, B, 1                  # one full-array block
    else:
        n_tiles = max(2, -(-B // row_tile))
        if n_tiles % 2:                               # even grid -> v7x 2-TC parity
            n_tiles += 1
        tb = ((-(-B // n_tiles)) + 7) // 8 * 8        # sublane-aligned row tile
        b_pad = n_tiles * tb

    lab2d = labels.reshape(B, 1).astype(jnp.int32)
    if b_pad != B:
        x_in = jnp.pad(x2d, ((0, b_pad - B), (0, 0)))
        lab_in = jnp.pad(lab2d, ((0, b_pad - B), (0, 0)))
    else:
        x_in, lab_in = x2d, lab2d

    in_specs = [
        pl.BlockSpec((tb, D_in), lambda i: (i, 0)),   # x row tile
        pl.BlockSpec((tb, 1), lambda i: (i, 0)),      # labels row tile
        pl.BlockSpec((D_in, L), lambda i: (0, 0)),    # projection W
        pl.BlockSpec((L, L), lambda i: (0, 0)),       # fused W_vo
        pl.BlockSpec((L, L), lambda i: (0, 0)),       # classifier W (lane-padded)
        pl.BlockSpec((8, L), lambda i: (0, 0)),       # packed bias/LN vectors
    ]
    out_specs = pl.BlockSpec((tb, W_slab), lambda i: (i, 0))

    cost = pl.CostEstimate(
        flops=int(2 * b_pad * (D_in * L + 2 * L * L) + 20 * b_pad * L),
        transcendentals=int(b_pad * (3 * L + 2)),
        bytes_accessed=int(4 * (b_pad * (D_in + 1 + W_slab)
                                + D_in * L + 2 * L * L + 8 * L)),
    )

    kernel = functools.partial(self_inf_s1_kernel, ln_eps=ln_eps, num_classes=C)
    slab = pl.pallas_call(
        kernel,
        out_shape=jax.ShapeDtypeStruct((b_pad, W_slab), jnp.float32),
        grid_spec=pltpu.PrefetchScalarGridSpec(
            num_scalar_prefetch=0,
            grid=(n_tiles,),
            in_specs=in_specs,
            out_specs=out_specs,
        ),
        compiler_params=pltpu.CompilerParams(
            dimension_semantics=("parallel",)),
        cost_estimate=cost,
    )(x_in, lab_in, fp["w_proj"], fp["w_vo"], fp["w_cls_pad"], fp["vecs"])
    return slab


def self_inf_forward(batch, feature_names, fp, *, num_heads):
    # Glue: concatenate informed features along the last dim.
    x = jnp.concatenate([batch[f] for f in feature_names], axis=-1)  # (B, S, D_in)
    B, S, D_in = x.shape
    if S != 1:
        # TODO(synk): general S>1 attention path not needed by this module
        # (classifier(...).squeeze(1) + per-sample CE require S==1).
        raise NotImplementedError("SelfInfModel Pallas kernel assumes S == 1")

    labels = batch["label"]
    slab = self_inf_pallas(x.reshape(B, D_in), labels, fp)

    L, C = fp["latent"], fp["num_classes"]
    emb = slab[:B, :L][:, None, :]                       # mha_output: (B, 1, L)
    logits = slab[:B, L:L + C]                           # (B, C)
    probs = slab[:B, 2 * L:2 * L + C]                    # (B, C)
    nll = slab[:B, 3 * L]                                # per-sample CE
    preds = slab[:B, 3 * L + 1].astype(jnp.int32)
    loss = jnp.mean(nll)

    # softmax over a single key is exactly 1.0 -> attention scores are ones.
    scores = jnp.ones((B, num_heads, 1, 1), jnp.float32)

    return {
        "subject_id": batch["subject_id"],
        "sample_id": batch["sample_id"],
        "embeddings": emb,
        "logits": logits,
        "probs": probs,
        "preds": preds,
        "labels": labels,
        "loss": loss,
        "self_inf_mha_scores": scores,
    }


# --------------------------- Deterministic init ----------------------------- #
def init_params(key, d_in, latent, num_classes):
    ks = iter(jax.random.split(key, 16))

    def lin_w(k, fan_in, fan_out):
        lim = 1.0 / math.sqrt(fan_in)
        return jax.random.uniform(k, (fan_in, fan_out), jnp.float32, -lim, lim)

    def lin_b(k, fan_in, fan_out):
        lim = 1.0 / math.sqrt(fan_in)
        return jax.random.uniform(k, (1, fan_out), jnp.float32, -lim, lim)

    p = {}
    p["w_proj"], p["b_proj"] = lin_w(next(ks), d_in, latent), lin_b(next(ks), d_in, latent)
    # Q/K weights exist in the model but are dead code for S==1 attention;
    # kept so the pure-JAX reference can prove the shortcut is exact.
    p["w_q"], p["b_q"] = lin_w(next(ks), latent, latent), lin_b(next(ks), latent, latent)
    p["w_k"], p["b_k"] = lin_w(next(ks), latent, latent), lin_b(next(ks), latent, latent)
    p["w_v"], p["b_v"] = lin_w(next(ks), latent, latent), lin_b(next(ks), latent, latent)
    p["w_o"], p["b_o"] = lin_w(next(ks), latent, latent), lin_b(next(ks), latent, latent)
    p["ln_g"] = jnp.ones((1, latent), jnp.float32)
    p["ln_b"] = jnp.zeros((1, latent), jnp.float32)
    p["w_cls"] = lin_w(next(ks), latent, num_classes)
    return p


# ---------------------------- Pure-JAX reference ---------------------------- #
def reference_forward(x, labels, params, *, num_heads, ln_eps=1e-5):
    """Full MHA (incl. Q/K) + CE reference — verifies the fused kernel exactly."""
    def silu(h):
        return h * jax.nn.sigmoid(h)

    hp = silu(x @ params["w_proj"] + params["b_proj"])
    q = hp @ params["w_q"] + params["b_q"]
    k = hp @ params["w_k"] + params["b_k"]
    v = hp @ params["w_v"] + params["b_v"]
    B, S, L = q.shape
    Dh = L // num_heads
    qh = q.reshape(B, S, num_heads, Dh).transpose(0, 2, 1, 3)
    kh = k.reshape(B, S, num_heads, Dh).transpose(0, 2, 1, 3)
    vh = v.reshape(B, S, num_heads, Dh).transpose(0, 2, 1, 3)
    s = jnp.einsum("bhqd,bhkd->bhqk", qh, kh) / math.sqrt(Dh)
    p = jax.nn.softmax(s, axis=-1)
    ctx = jnp.einsum("bhqk,bhkd->bhqd", p, vh).transpose(0, 2, 1, 3).reshape(B, S, L)
    mha = ctx @ params["w_o"] + params["b_o"]
    mu = mha.mean(-1, keepdims=True)
    var = ((mha - mu) ** 2).mean(-1, keepdims=True)
    ln = (mha - mu) / jnp.sqrt(var + ln_eps) * params["ln_g"] + params["ln_b"]
    logits = (silu(ln) @ params["w_cls"]).squeeze(1)
    logp = logits - jax.scipy.special.logsumexp(logits, axis=-1, keepdims=True)
    loss = -jnp.mean(jnp.take_along_axis(logp, labels[:, None], axis=-1))
    return mha, logits, jax.nn.softmax(logits, -1), jnp.argmax(logits, -1), loss, p


# --------------------------------- Main ------------------------------------- #
if __name__ == "__main__":
    # Config implied by the module: two informed features (dims 16 + 16 = 32),
    # latent_dim=32, num_heads=4, num_classes=4, sequence length 1.
    B, S = 2, 1
    FEATURE_DIMS = {"feat_a": 16, "feat_b": 16}
    LATENT, HEADS, NUM_CLASSES = 32, 4, 4
    D_IN = sum(FEATURE_DIMS.values())

    key = jax.random.PRNGKey(0)
    k_par, k_a, k_b = jax.random.split(key, 3)
    params = init_params(k_par, D_IN, LATENT, NUM_CLASSES)
    fp = fuse_params(params)

    batch = {
        "feat_a": jax.random.normal(k_a, (B, S, FEATURE_DIMS["feat_a"]), jnp.float32),
        "feat_b": jax.random.normal(k_b, (B, S, FEATURE_DIMS["feat_b"]), jnp.float32),
        "label": jnp.array([1, 3], dtype=jnp.int32),
        "subject_id": jnp.arange(B, dtype=jnp.int32),
        "sample_id": jnp.arange(B, dtype=jnp.int32) + 100,
    }

    out = self_inf_forward(batch, ["feat_a", "feat_b"], fp, num_heads=HEADS)
    jax.block_until_ready(out["loss"])

    # Sanity check against the full-attention (Q/K included) reference.
    x = jnp.concatenate([batch["feat_a"], batch["feat_b"]], axis=-1)
    r_emb, r_log, r_prob, r_pred, r_loss, r_sc = reference_forward(
        x, batch["label"], params, num_heads=HEADS)
    assert jnp.allclose(out["embeddings"], r_emb, atol=1e-4, rtol=1e-4)
    assert jnp.allclose(out["logits"], r_log, atol=1e-4, rtol=1e-4)
    assert jnp.allclose(out["probs"], r_prob, atol=1e-4, rtol=1e-4)
    assert bool(jnp.all(out["preds"] == r_pred))
    assert jnp.allclose(out["loss"], r_loss, atol=1e-4)
    assert jnp.allclose(out["self_inf_mha_scores"], r_sc, atol=1e-5)

    # Exercise the multi-tile (even grid, padded last tile) path.
    B2 = 300
    k_big, k_lab = jax.random.split(jax.random.PRNGKey(1))
    big_batch = {
        "feat_a": jax.random.normal(k_big, (B2, S, FEATURE_DIMS["feat_a"]), jnp.float32),
        "feat_b": jax.random.normal(k_lab, (B2, S, FEATURE_DIMS["feat_b"]), jnp.float32),
        "label": jax.random.randint(jax.random.PRNGKey(2), (B2,), 0, NUM_CLASSES),
        "subject_id": jnp.arange(B2, dtype=jnp.int32),
        "sample_id": jnp.arange(B2, dtype=jnp.int32) + 1000,
    }
    out2 = self_inf_forward(big_batch, ["feat_a", "feat_b"], fp, num_heads=HEADS)
    jax.block_until_ready(out2["loss"])
    x2 = jnp.concatenate([big_batch["feat_a"], big_batch["feat_b"]], axis=-1)
    r_emb2, r_log2, r_prob2, r_pred2, r_loss2, _ = reference_forward(
        x2, big_batch["label"], params, num_heads=HEADS)
    assert jnp.allclose(out2["embeddings"], r_emb2, atol=1e-4, rtol=1e-4)
    assert jnp.allclose(out2["logits"], r_log2, atol=1e-4, rtol=1e-4)
    assert jnp.allclose(out2["probs"], r_prob2, atol=1e-4, rtol=1e-4)
    assert bool(jnp.all(out2["preds"] == r_pred2))
    assert jnp.allclose(out2["loss"], r_loss2, atol=1e-4)

    print("KERNEL_OK")
</pallas_src>

<mosaic_0001>
module attributes {stable_mosaic.version = 11 : i64} {
  func.func @self_inf_s1_kernel(%arg0: i32, %arg1: memref<2x32xf32, #tpu.memory_space<vmem>>, %arg2: memref<2x1xi32, #tpu.memory_space<vmem>>, %arg3: memref<32x32xf32, #tpu.memory_space<vmem>>, %arg4: memref<32x32xf32, #tpu.memory_space<vmem>>, %arg5: memref<32x32xf32, #tpu.memory_space<vmem>>, %arg6: memref<8x32xf32, #tpu.memory_space<vmem>>, %arg7: memref<2x128xf32, #tpu.memory_space<vmem>>) attributes {dimension_semantics = [#tpu.dimension_semantics<parallel>], iteration_bounds = array<i64: 1>, scalar_prefetch = 0 : i64, scratch_operands = 0 : i64, tpu.core_type = #tpu.core_type<tc>, window_params = [{transform_indices = @transform_0, window_bounds = array<i64: 2, 32>}, {transform_indices = @transform_1, window_bounds = array<i64: 2, 1>}, {pipeline_mode = #tpu.pipeline_mode<synchronous>, transform_indices = @transform_2, window_bounds = array<i64: 32, 32>}, {pipeline_mode = #tpu.pipeline_mode<synchronous>, transform_indices = @transform_3, window_bounds = array<i64: 32, 32>}, {pipeline_mode = #tpu.pipeline_mode<synchronous>, transform_indices = @transform_4, window_bounds = array<i64: 32, 32>}, {pipeline_mode = #tpu.pipeline_mode<synchronous>, transform_indices = @transform_5, window_bounds = array<i64: 8, 32>}, {transform_indices = @transform_6, window_bounds = array<i64: 2, 128>}]} {
    %c0 = arith.constant 0 : index
    %c0_0 = arith.constant 0 : index
    %0 = vector.load %arg1[%c0, %c0_0] : memref<2x32xf32, #tpu.memory_space<vmem>>, vector<2x32xf32>
    %c0_1 = arith.constant 0 : index
    %c0_2 = arith.constant 0 : index
    %1 = vector.load %arg6[%c0_1, %c0_2] : memref<8x32xf32, #tpu.memory_space<vmem>>, vector<8x32xf32>
    %2 = vector.extract_strided_slice %1 {offsets = [0, 0], sizes = [1, 32], strides = [1, 1]} : vector<8x32xf32> to vector<1x32xf32>
    %3 = vector.extract_strided_slice %1 {offsets = [1, 0], sizes = [1, 32], strides = [1, 1]} : vector<8x32xf32> to vector<1x32xf32>
    %4 = vector.extract_strided_slice %1 {offsets = [2, 0], sizes = [1, 32], strides = [1, 1]} : vector<8x32xf32> to vector<1x32xf32>
    %5 = vector.extract_strided_slice %1 {offsets = [3, 0], sizes = [1, 32], strides = [1, 1]} : vector<8x32xf32> to vector<1x32xf32>
    %c0_3 = arith.constant 0 : index
    %c0_4 = arith.constant 0 : index
    %6 = vector.load %arg3[%c0_3, %c0_4] : memref<32x32xf32, #tpu.memory_space<vmem>>, vector<32x32xf32>
    %cst = arith.constant dense<0.000000e+00> : vector<2x32xf32>
    %7 = tpu.matmul %0, %6, %cst {dimension_numbers = #tpu.dot_dimension_numbers<[1], [0], [0], [1], [0, 0, 1, 1], [], []>} : vector<2x32xf32>, vector<32x32xf32>, vector<2x32xf32> -> vector<2x32xf32>
    %8 = vector.broadcast %2 : vector<1x32xf32> to vector<2x32xf32>
    %9 = arith.addf %7, %8 : vector<2x32xf32>
    %10 = arith.negf %9 : vector<2x32xf32>
    %11 = math.exp %10 : vector<2x32xf32>
    %cst_5 = arith.constant 1.000000e+00 : f32
    %12 = vector.broadcast %cst_5 : f32 to vector<2x32xf32>
    %13 = arith.addf %12, %11 : vector<2x32xf32>
    %14 = arith.divf %12, %13 : vector<2x32xf32>
    %15 = arith.mulf %9, %14 : vector<2x32xf32>
    %c0_6 = arith.constant 0 : index
    %c0_7 = arith.constant 0 : index
    %16 = vector.load %arg4[%c0_6, %c0_7] : memref<32x32xf32, #tpu.memory_space<vmem>>, vector<32x32xf32>
    %cst_8 = arith.constant dense<0.000000e+00> : vector<2x32xf32>
    %17 = tpu.matmul %15, %16, %cst_8 {dimension_numbers = #tpu.dot_dimension_numbers<[1], [0], [0], [1], [0, 0, 1, 1], [], []>} : vector<2x32xf32>, vector<32x32xf32>, vector<2x32xf32> -> vector<2x32xf32>
    %18 = vector.broadcast %3 : vector<1x32xf32> to vector<2x32xf32>
    %19 = arith.addf %17, %18 : vector<2x32xf32>
    %cst_9 = arith.constant dense<0.000000e+00> : vector<2xf32>
    %20 = vector.multi_reduction <add>, %19, %cst_9 [1] : vector<2x32xf32> to vector<2xf32>
    %21 = vector.shape_cast %20 : vector<2xf32> to vector<2x1xf32>
    %cst_10 = arith.constant 3.200000e+01 : f32
    %22 = vector.broadcast %cst_10 : f32 to vector<2x1xf32>
    %23 = arith.divf %21, %22 : vector<2x1xf32>
    %24 = vector.broadcast %23 : vector<2x1xf32> to vector<2x32xf32>
    %25 = arith.subf %19, %24 : vector<2x32xf32>
    %26 = arith.mulf %25, %25 : vector<2x32xf32>
    %cst_11 = arith.constant dense<0.000000e+00> : vector<2xf32>
    %27 = vector.multi_reduction <add>, %26, %cst_11 [1] : vector<2x32xf32> to vector<2xf32>
    %28 = vector.shape_cast %27 : vector<2xf32> to vector<2x1xf32>
    %cst_12 = arith.constant 3.200000e+01 : f32
    %29 = vector.broadcast %cst_12 : f32 to vector<2x1xf32>
    %30 = arith.divf %28, %29 : vector<2x1xf32>
    %31 = vector.broadcast %23 : vector<2x1xf32> to vector<2x32xf32>
    %32 = arith.subf %19, %31 : vector<2x32xf32>
    %cst_13 = arith.constant 9.99999974E-6 : f32
    %33 = vector.broadcast %cst_13 : f32 to vector<2x1xf32>
    %34 = arith.addf %30, %33 : vector<2x1xf32>
    %35 = math.rsqrt %34 : vector<2x1xf32>
    %36 = vector.broadcast %35 : vector<2x1xf32> to vector<2x32xf32>
    %37 = arith.mulf %32, %36 : vector<2x32xf32>
    %38 = vector.broadcast %4 : vector<1x32xf32> to vector<2x32xf32>
    %39 = arith.mulf %37, %38 : vector<2x32xf32>
    %40 = vector.broadcast %5 : vector<1x32xf32> to vector<2x32xf32>
    %41 = arith.addf %39, %40 : vector<2x32xf32>
    %42 = arith.negf %41 : vector<2x32xf32>
    %43 = math.exp %42 : vector<2x32xf32>
    %cst_14 = arith.constant 1.000000e+00 : f32
    %44 = vector.broadcast %cst_14 : f32 to vector<2x32xf32>
    %45 = arith.addf %44, %43 : vector<2x32xf32>
    %46 = arith.divf %44, %45 : vector<2x32xf32>
    %47 = arith.mulf %41, %46 : vector<2x32xf32>
    %c0_15 = arith.constant 0 : index
    %c0_16 = arith.constant 0 : index
    %48 = vector.load %arg5[%c0_15, %c0_16] : memref<32x32xf32, #tpu.memory_space<vmem>>, vector<32x32xf32>
    %cst_17 = arith.constant dense<0.000000e+00> : vector<2x32xf32>
    %49 = tpu.matmul %47, %48, %cst_17 {dimension_numbers = #tpu.dot_dimension_numbers<[1], [0], [0], [1], [0, 0, 1, 1], [], []>} : vector<2x32xf32>, vector<32x32xf32>, vector<2x32xf32> -> vector<2x32xf32>
    %50 = tpu.iota {dimensions = array<i32: 1>} : vector<2x32xi32>
    %c4_i32 = arith.constant 4 : i32
    %51 = vector.broadcast %c4_i32 : i32 to vector<2x32xi32>
    %52 = arith.cmpi slt, %50, %51 : vector<2x32xi32>
    %cst_18 = arith.constant -1.000000e+30 : f32
    %53 = vector.broadcast %cst_18 : f32 to vector<2x32xf32>
    %54 = arith.select %52, %49, %53 : vector<2x32xi1>, vector<2x32xf32>
    %cst_19 = arith.constant dense<0xFF800000> : vector<2xf32>
    %55 = vector.multi_reduction <maximumf>, %54, %cst_19 [1] : vector<2x32xf32> to vector<2xf32>
    %56 = vector.shape_cast %55 : vector<2xf32> to vector<2x1xf32>
    %57 = vector.broadcast %56 : vector<2x1xf32> to vector<2x32xf32>
    %58 = arith.subf %54, %57 : vector<2x32xf32>
    %59 = math.exp %58 : vector<2x32xf32>
    %cst_20 = arith.constant dense<0.000000e+00> : vector<2xf32>
    %60 = vector.multi_reduction <add>, %59, %cst_20 [1] : vector<2x32xf32> to vector<2xf32>
    %61 = vector.shape_cast %60 : vector<2xf32> to vector<2x1xf32>
    %62 = vector.broadcast %61 : vector<2x1xf32> to vector<2x32xf32>
    %63 = arith.divf %59, %62 : vector<2x32xf32>
    %cst_21 = arith.constant 0.000000e+00 : f32
    %64 = vector.broadcast %cst_21 : f32 to vector<2x32xf32>
    %65 = arith.select %52, %63, %64 : vector<2x32xi1>, vector<2x32xf32>
    %66 = math.log %61 : vector<2x1xf32>
    %67 = vector.broadcast %66 : vector<2x1xf32> to vector<2x32xf32>
    %68 = arith.subf %58, %67 : vector<2x32xf32>
    %c0_22 = arith.constant 0 : index
    %c0_23 = arith.constant 0 : index
    %69 = vector.load %arg2[%c0_22, %c0_23] : memref<2x1xi32, #tpu.memory_space<vmem>>, vector<2x1xi32>
    %70 = vector.broadcast %69 : vector<2x1xi32> to vector<2x32xi32>
    %71 = arith.cmpi eq, %50, %70 : vector<2x32xi32>
    %cst_24 = arith.constant 0.000000e+00 : f32
    %72 = vector.broadcast %cst_24 : f32 to vector<2x32xf32>
    %73 = arith.select %71, %68, %72 : vector<2x32xi1>, vector<2x32xf32>
    %cst_25 = arith.constant dense<0.000000e+00> : vector<2xf32>
    %74 = vector.multi_reduction <add>, %73, %cst_25 [1] : vector<2x32xf32> to vector<2xf32>
    %75 = vector.shape_cast %74 : vector<2xf32> to vector<2x1xf32>
    %cst_26 = arith.constant 0.000000e+00 : f32
    %76 = vector.broadcast %cst_26 : f32 to vector<2x1xf32>
    %77 = arith.subf %76, %75 : vector<2x1xf32>
    %78 = vector.broadcast %56 : vector<2x1xf32> to vector<2x32xf32>
    %79 = arith.cmpf oge, %54, %78 : vector<2x32xf32>
    %80 = arith.andi %52, %79 : vector<2x32xi1>
    %c32_i32 = arith.constant 32 : i32
    %81 = vector.broadcast %c32_i32 : i32 to vector<2x32xi32>
    %82 = arith.select %80, %50, %81 : vector<2x32xi1>, vector<2x32xi32>
    %cst_27 = arith.constant dense<2147483647> : vector<2xi32>
    %83 = vector.multi_reduction <minsi>, %82, %cst_27 [1] : vector<2x32xi32> to vector<2xi32>
    %84 = vector.shape_cast %83 : vector<2xi32> to vector<2x1xi32>
    %85 = arith.sitofp %84 : vector<2x1xi32> to vector<2x1xf32>
    %c0_i32 = arith.constant 0 : i32
    %86 = vector.broadcast %c0_i32 : i32 to vector<2x32xi32>
    %87 = arith.cmpi eq, %50, %86 : vector<2x32xi32>
    %cst_28 = arith.constant 0.000000e+00 : f32
    %88 = vector.shape_cast %77 : vector<2x1xf32> to vector<2x1xf32>
    %89 = vector.broadcast %88 : vector<2x1xf32> to vector<2x32xf32>
    %90 = vector.broadcast %cst_28 : f32 to vector<2x32xf32>
    %91 = arith.select %87, %89, %90 : vector<2x32xi1>, vector<2x32xf32>
    %c1_i32 = arith.constant 1 : i32
    %92 = vector.broadcast %c1_i32 : i32 to vector<2x32xi32>
    %93 = arith.cmpi eq, %50, %92 : vector<2x32xi32>
    %cst_29 = arith.constant 0.000000e+00 : f32
    %94 = vector.shape_cast %85 : vector<2x1xf32> to vector<2x1xf32>
    %95 = vector.broadcast %94 : vector<2x1xf32> to vector<2x32xf32>
    %96 = vector.broadcast %cst_29 : f32 to vector<2x32xf32>
    %97 = arith.select %93, %95, %96 : vector<2x32xi1>, vector<2x32xf32>
    %98 = arith.addf %91, %97 : vector<2x32xf32>
    %99 = tpu.concatenate %19, %49, %65, %98 in 1 : vector<2x32xf32>, vector<2x32xf32>, vector<2x32xf32>, vector<2x32xf32> -> vector<2x128xf32>
    %c0_30 = arith.constant 0 : index
    %c0_31 = arith.constant 0 : index
    %100 = vector.load %arg7[%c0_30, %c0_31] : memref<2x128xf32, #tpu.memory_space<vmem>>, vector<2x128xf32>
    tpu.vector_store %arg7[%c0_30, %c0_31], %99 {strides = array<i32>} : memref<2x128xf32, #tpu.memory_space<vmem>>, vector<2x128xf32>,
    return
  }
  func.func @transform_0(%arg0: i32) -> (i32, i32) {
    %c0_i32 = arith.constant 0 : i32
    %c0_i32_0 = arith.constant 0 : i32
    return %arg0, %c0_i32 : i32, i32
  }
  func.func @transform_1(%arg0: i32) -> (i32, i32) {
    %c0_i32 = arith.constant 0 : i32
    %c0_i32_0 = arith.constant 0 : i32
    return %arg0, %c0_i32 : i32, i32
  }
  func.func @transform_2(%arg0: i32) -> (i32, i32) {
    %c0_i32 = arith.constant 0 : i32
    %c0_i32_0 = arith.constant 0 : i32
    %c0_i32_1 = arith.constant 0 : i32
    return %c0_i32, %c0_i32_0 : i32, i32
  }
  func.func @transform_3(%arg0: i32) -> (i32, i32) {
    %c0_i32 = arith.constant 0 : i32
    %c0_i32_0 = arith.constant 0 : i32
    %c0_i32_1 = arith.constant 0 : i32
    return %c0_i32, %c0_i32_0 : i32, i32
  }
  func.func @transform_4(%arg0: i32) -> (i32, i32) {
    %c0_i32 = arith.constant 0 : i32
    %c0_i32_0 = arith.constant 0 : i32
    %c0_i32_1 = arith.constant 0 : i32
    return %c0_i32, %c0_i32_0 : i32, i32
  }
  func.func @transform_5(%arg0: i32) -> (i32, i32) {
    %c0_i32 = arith.constant 0 : i32
    %c0_i32_0 = arith.constant 0 : i32
    %c0_i32_1 = arith.constant 0 : i32
    return %c0_i32, %c0_i32_0 : i32, i32
  }
  func.func @transform_6(%arg0: i32) -> (i32, i32) {
    %c0_i32 = arith.constant 0 : i32
    %c0_i32_0 = arith.constant 0 : i32
    return %arg0, %c0_i32 : i32, i32
  }
}

</mosaic_0001>

<bundles_post_ra>
// kernel: tpu_custom_call.1
= control target key start
LH: loop header
LB: loop body
LE: loop exit
PB: predicated region body
PF: predicated region fallthrough
CT: control target
= control target key end

     0   :  { %11 = vsyncpa [#allocation3], 0  ;;  %s777_s0 = inlined_call_operand.vmem [shape: f32[2,32], index: 0, kind: input, shape index: {}]   ;;  %s778_s1 = inlined_call_operand.vmem [shape: s32[2,1], index: 1, kind: input, shape index: {}]   ;;  %s779_s2 = inlined_call_operand.hbm [shape: f32[32,32], index: 2, kind: input, shape index: {}]   ;;  %s780_s3 = inlined_call_operand.hbm [shape: f32[32,32], index: 3, kind: input, shape index: {}]   ;;  %s781_s4 = inlined_call_operand.hbm [shape: f32[32,32], index: 4, kind: input, shape index: {}]   ;;  %s782_s5 = inlined_call_operand.vmem [shape: f32[8,32], index: 5, kind: input, shape index: {}]   ;;  %s783_s6 = inlined_call_operand.hbm [shape: f32[2,128], index: 6, kind: output, shape index: {}]  }
   0x1   :  { %12 = vsyncpa [#allocation6], 0 }
   0x2   :  { %13 = vsyncpa [#allocation4], 0  ;;  %s629_s21 = smov [#allocation5]   ;;  %s630_s23 = smov [#allocation2]  }
   0x3   :  { %s35_s22 = sshll.u32 %s629_s21, 4  ;;  %s23_s24 = sshll.u32 %s630_s23, 4  ;;  %s36_s22 = int_to_ptr.vmem [resolvable:$true] %s35_s22  ;;  %s677_s24 = int_to_ptr.vmem [resolvable:$true] %s23_s24 }
   0x4   :  { %s535_s27 = scalar_lea.hbm %s780_s3, 512 }
   0x5   :  { %p536_p0 = scmp.ne.s32.totalorder %s780_s3, %s535_s27  ;;  %p539_p1 = scmp.lt.u32.totalorder %s535_s27, %s780_s3 }
   0x7   :  { %p541_p2 = pnand %p539_p1, %p536_p0 }
   0x9   :  { %544 = shalt.err (!%p541_p2)
}
   0xa   :  { %s545_s8 = scalar_lea.vmem %s36_s22, 512  ;;  %p550_p4 = scmp.lt.s32.totalorder %s36_s22, %s36_s22 }
   0xb   :  { %p546_p3 = scmp.ne.s32.totalorder %s36_s22, %s545_s8  ;;  %p551_p5 = scmp.lt.s32.totalorder %s545_s8, %s545_s8 }
   0xd   :  { %p552_p6 = por %p551_p5, %p550_p4 }
   0xf   :  { %p553_p7 = pnand %p552_p6, %p546_p3 }
  0x11   :  { %556 = shalt.err (!%p553_p7)
}
  0x12   :  { %s631_s9 = smov 128   ;;  %s632_s10 = smov 8  }
  0x13   :  { %41 = dma.hbm_to_vmem [thread:$0]  %s780_s3, 512, %s36_s22, [#allocation6], %s631_s9, %s631_s9, %s632_s10  }
  0x14   :  { %s557_s15 = scalar_lea.hbm %s779_s2, 512 }
  0x15   :  { %p558_p8 = scmp.ne.s32.totalorder %s779_s2, %s557_s15  ;;  %p561_p9 = scmp.lt.u32.totalorder %s557_s15, %s779_s2 }
  0x17   :  { %p563_p10 = pnand %p561_p9, %p558_p8 }
  0x19   :  { %566 = shalt.err (!%p563_p10)
}
  0x1a   :  { %s567_s20 = scalar_lea.vmem %s677_s24, 512  ;;  %p572_p12 = scmp.lt.s32.totalorder %s677_s24, %s677_s24 }
  0x1b   :  { %p568_p11 = scmp.ne.s32.totalorder %s677_s24, %s567_s20  ;;  %p573_p13 = scmp.lt.s32.totalorder %s567_s20, %s567_s20 }
  0x1d   :  { %p574_p0 = por %p573_p13, %p572_p12 }
  0x1f   :  { %p575_p1 = pnand %p574_p0, %p568_p11 }
  0x21   :  { %578 = shalt.err (!%p575_p1)
}
  0x22   :  { %29 = dma.hbm_to_vmem [thread:$0]  %s779_s2, 512, %s677_s24, [#allocation3], %s631_s9, %s631_s9, %s632_s10  }
  0x23   :  { %s633_s22 = smov [#allocation7]   ;;  %s579_s27 = scalar_lea.hbm %s781_s4, 512 }
  0x24   :  { %s47_s23 = sshll.u32 %s633_s22, 4  ;;  %p580_p2 = scmp.ne.s32.totalorder %s781_s4, %s579_s27  ;;  %s48_s23 = int_to_ptr.vmem [resolvable:$true] %s47_s23 }
  0x25   :  { %p583_p3 = scmp.lt.u32.totalorder %s579_s27, %s781_s4 }
  0x27   :  { %p585_p4 = pnand %p583_p3, %p580_p2 }
  0x29   :  { %588 = shalt.err (!%p585_p4)
}
  0x2a   :  { %s589_s8 = scalar_lea.vmem %s48_s23, 512  ;;  %p594_p6 = scmp.lt.s32.totalorder %s48_s23, %s48_s23 }
  0x2b   :  { %p590_p5 = scmp.ne.s32.totalorder %s48_s23, %s589_s8  ;;  %p595_p7 = scmp.lt.s32.totalorder %s589_s8, %s589_s8 }
  0x2d   :  { %p596_p8 = por %p595_p7, %p594_p6 }
  0x2f   :  { %p597_p9 = pnand %p596_p8, %p590_p5 }
  0x31   :  { %600 = shalt.err (!%p597_p9)
}
  0x32   :  { %53 = dma.hbm_to_vmem [thread:$0]  %s781_s4, 512, %s48_s23, [#allocation6], %s631_s9, %s631_s9, %s632_s10  }
  0x33   :  { %623 = dma.done.wait [#allocation3], 512  }
  0x34   :  { %624 = vsyncadd [#allocation3], 4294966784 }
  0x35   :  { %625 = dma.done.wait [#allocation6], 1024  }
  0x36   :  { %626 = vsyncadd [#allocation6], 4294966272  ;;  %v634_v0 = vmov 0.0|0.0   ;;  %vm635_vm0 = vmmov 0   ;;  %v636_v1 = vmov 0.0   ;;  %v67_v2 = vld [vmem:[#allocation2] sm:$0xff]  ;;  %v71_v15 = vlaneseq }
  0x37   :  { %486 = vmatprep.subr.bf16.mxu0 %v634_v0  ;;  %461 = vmatprep.mubr.msk.f32.mxu0 %vm635_vm0, %v636_v1  ;;  %v68_v3 = vld [vmem:[#allocation2 + $0x8] sm:$0xff]  ;;  %v69_v4 = vld [vmem:[#allocation2 + $0x10] sm:$0xff]  ;;  %v70_v6 = vld [vmem:[#allocation2 + $0x18] sm:$0xff]  ;;  %vm75_vm1 = vcmask 261120   ;;  %vm237_vm2 = vcmask 254976   ;;  %s638_s12 = smov 64  }
  0x38   :  { %492 = vmatprep.subr.bf16.mxu1 %v634_v0  ;;  %472 = vmatprep.mubr.msk.f32.mxu1 %vm635_vm0, %v636_v1  ;;  %v487_v5 = vpack.c.bf16 %v68_v3, %v67_v2  ;;  %v490_v7 = vpack.c.bf16 %v70_v6, %v69_v4  ;;  %v65_v8 = vld [vmem:[%s777_s0] sm:$0x3]  ;;  %v157_v10 = vld [vmem:[#allocation5 + $0x8] sm:$0xff]  ;;  %v158_v12 = vld [vmem:[#allocation5 + $0x10] sm:$0xff]  ;;  %v72_v16 = vshrl.u32 %v71_v15, 7  ;;  %v347_v61 = vand.u32 127, %v71_v15 }
  0x39   :  { %v156_v9 = vld [vmem:[#allocation5] sm:$0xff]  ;;  %v159_v13 = vld [vmem:[#allocation5 + $0x18] sm:$0xff]  ;;  %v270_v40 = vld [vmem:[#allocation7 + $0x8] sm:$0xff]  ;;  %v637_v2 = vmov 0   ;;  %s640_s13 = smov 96   ;;  %vm412_vm10 = vcmask 523264  }
  0x3a   :  { %488 = vmatpush3.bf16.msra.mxu0 %v487_v5  ;;  %v493_v11 = vpack.c.bf16 %v157_v10, %v156_v9  ;;  %v496_v14 = vpack.c.bf16 %v159_v13, %v158_v12  ;;  %v73_v17 = vsub.s32 0, %v72_v16  ;;  %v66_v18 = vld [vmem:[%s782_s5] sm:$0xff]  ;;  %v162_v28 = vsub.s32 1, %v72_v16  ;;  %v271_v41 = vld [vmem:[#allocation7 + $0x10] sm:$0xff]  ;;  %v272_v43 = vld [vmem:[#allocation7 + $0x18] sm:$0xff]  ;;  %517 = vset.pattern.permute.xlu1 %v637_v2  ;;  %s641_s14 = smov [#allocation8]  }
  0x3b   :  { %489 = vmatprep.subr.bf16.mxu0 %v634_v0  ;;  %v269_v39 = vld [vmem:[#allocation7] sm:$0xff]  ;;  %v502_v44 = vpack.c.bf16 %v272_v43, %v271_v41  ;;  %v254_v48 = vsub.s32 2, %v72_v16  ;;  %v259_v49 = vsub.s32 3, %v72_v16  ;;  %vm348_vm3 = vcmp.lt.s32.totalorder %v347_v61, 4  ;;  %518 = vset.pattern.permute.xlu0 %v637_v2  ;;  %s423_s15 = sshll.u32 %s641_s14, 4  ;;  %s424_s15 = int_to_ptr.vmem [resolvable:$true] %s423_s15 }
  0x3c   :  { %494 = vmatpush3.bf16.msra.mxu1 %v493_v11  ;;  %v74_v19 = vrot.slane %v66_v18, %v73_v17  ;;  %v163_v29 = vrot.slane %v66_v18, %v162_v28  ;;  %v499_v42 = vpack.c.bf16 %v270_v40, %v269_v39  ;;  %v365_v12 = vld [vmem:[%s778_s1] sm:$0x3]  ;;  %s639_s1 = smov 32   ;;  %vm394_vm8 = vcmp.eq.s32.totalorder %v347_v61, 0  ;;  %s601_s16 = scalar_lea.vmem %s424_s15, 32 }
  0x3d   :  { %495 = vmatprep.subr.bf16.mxu1 %v634_v0  ;;  %v255_v50 = vrot.slane %v66_v18, %v254_v48  ;;  %v260_v52 = vrot.slane %v66_v18, %v259_v49  ;;  %vm396_vm9 = vcmp.eq.s32.totalorder %v347_v61, 1  ;;  %vm414_vm11 = vcmask 785408   ;;  %p602_p10 = scmp.ne.s32.totalorder %s424_s15, %s601_s16  ;;  %p606_p11 = scmp.lt.s32.totalorder %s424_s15, %s424_s15 }
  0x3e   :  { %491 = vmatpush3.bf16.msra.mxu0 %v490_v7  ;;  %p607_p12 = scmp.lt.s32.totalorder %s601_s16, %s601_s16 }
  0x3f   :  { %498 = vmatprep.subr.bf16.mxu0 %v634_v0 }
  0x40   :  { %497 = vmatpush3.bf16.msra.mxu1 %v496_v14  ;;  %p608_p13 = por %p607_p12, %p606_p11 }
  0x41   :  { %462 = vmatmul.mubr.msk.f32.vlgmr.msra.gmra.mrb[0].mxu0 %vm75_vm1, %v65_v8 }
  0x42   :  { %483 = vmatprep.mubr.msk.f32.mxu0 %vm635_vm0, %v636_v1  ;;  %500 = vmatpush3.bf16.msra.mxu0 %v499_v42  ;;  %p609_p0 = pnand %p608_p13, %p602_p10 }
  0x43   :  { %501 = vmatprep.subr.bf16.mxu0 %v634_v0 }
  0x46   :  { %503 = vmatpush3.bf16.msra.mxu0 %v502_v44 }
 0x114   :  { %v145_v20 = vpop.f32.mrb[0].mxu0 }
 0x115   :  { %v146_v21 = vadd.f32 %v145_v20, %v74_v19  ;;  %v463_v22 = vpop.f32.mrb[1].mxu0 }
 0x117   :  { %v434_v23 = vmul.f32 -1.442695, %v146_v21 }
 0x119   :  { %519 = vpow2.f32 %v434_v23 }
 0x123   :  { %v520_v24 = vpop.eup %519 }
 0x124   :  { %v152_v25 = vadd.f32 1.0, %v520_v24 }
 0x126   :  { %521 = vrcp.f32 %v152_v25 }
 0x130   :  { %v522_v26 = vpop.eup %521 }
 0x131   :  { %v155_v27 = vmul.f32 %v522_v26, %v146_v21 }
 0x133   :  { %473 = vmatmul.mubr.msk.f32.vlgmr.msra.gmra.mrb[0].mxu1 %vm75_vm1, %v155_v27 }
 0x206   :  { %v233_v30 = vpop.f32.mrb[0].mxu1 }
 0x207   :  { %v745_v31 = vadd.f32 %v233_v30, %v163_v29  ;;  %v474_v32 = vpop.f32.mrb[1].mxu1 }
 0x209   :  { %v238_v33 = vsel %vm237_vm2, %v745_v31, 0.0 }
 0x20a   :  { %239 = vadd.xlane.f32.xlu0 %v238_v33 }
 0x297   :  { %v240_v34 = vpop.xlane.xlu0 %239 }
 0x298   :  { %v242_v35 = vmul.f32 0.03125, %v240_v34 }
 0x29a   :  { %v243_v36 = vsub.f32 %v745_v31, %v242_v35 }
 0x29c   :  { %v244_v37 = vmul.f32 %v243_v36, %v243_v36 }
 0x29e   :  { %v245_v38 = vsel %vm237_vm2, %v244_v37, 0.0 }
 0x29f   :  { %246 = vadd.xlane.f32.xlu0 %v245_v38 }
 0x32c   :  { %v247_v45 = vpop.xlane.xlu0 %246 }
 0x32d   :  { %v248_v46 = vmul.f32 0.03125, %v247_v45 }
 0x32f   :  { %v249_v47 = vadd.f32 1e-05, %v248_v46 }
 0x331   :  { %523 = vrsqrt.f32 %v249_v47 }
 0x33b   :  { %v524_v51 = vpop.eup %523 }
 0x33c   :  { %v251_v53 = vmul.f32 %v524_v51, %v243_v36 }
 0x33e   :  { %v256_v54 = vmul.f32 %v255_v50, %v251_v53 }
 0x340   :  { %v261_v55 = vadd.f32 %v260_v52, %v256_v54 }
 0x342   :  { %v436_v56 = vmul.f32 -1.442695, %v261_v55 }
 0x344   :  { %525 = vpow2.f32 %v436_v56 }
 0x34e   :  { %v526_v57 = vpop.eup %525 }
 0x34f   :  { %v265_v58 = vadd.f32 1.0, %v526_v57 }
 0x351   :  { %527 = vrcp.f32 %v265_v58 }
 0x35b   :  { %v528_v59 = vpop.eup %527 }
 0x35c   :  { %v268_v60 = vmul.f32 %v528_v59, %v261_v55 }
 0x35e   :  { %484 = vmatmul.mubr.msk.f32.vlgmr.msra.gmra.mrb[2].mxu0 %vm75_vm1, %v268_v60 }
 0x431   :  { %v342_v62 = vpop.f32.mrb[2].mxu0 }
 0x432   :  { %v349_v63 = vsel %vm348_vm3, %v342_v62, -1e+30  ;;  %v485_v0 = vpop.f32.mrb[3].mxu0 }
 0x433   :  { %v350_v1 = vsel %vm237_vm2, %v349_v63, -inf }
 0x434   :  { %351 = vmax.xlane.f32.xlu1 %v350_v1 }
 0x4c1   :  { %v352_v3 = vpop.xlane.xlu1 %351 }
 0x4c2   :  { %v353_v4 = vsub.f32 %v349_v63, %v352_v3  ;;  %vm375_vm4 = vcmp.ge.f32.partialorder %v349_v63, %v352_v3 }
 0x4c3   :  { %vm376_vm5 = vmand %vm348_vm3, %vm375_vm4 }
 0x4c4   :  { %v354_v5 = vmul.f32 1.442695, %v353_v4  ;;  %v377_v6 = vsel %vm376_vm5, %v347_v61, 32 }
 0x4c5   :  { %v378_v7 = vsel %vm237_vm2, %v377_v6, 2147483647 }
 0x4c6   :  { %529 = vpow2.f32 %v354_v5  ;;  %v380_v8 = vshra.s32 %v378_v7, 16  ;;  %v379_v13 = vand.u32 65535, %v378_v7 }
 0x4c8   :  { %v382_v9 = vcvt.s32.f32 %v380_v8  ;;  %v381_v15 = vcvt.s32.f32 %v379_v13 }
 0x4ca   :  { %383 = vmin.xlane.f32.xlu0 %v382_v9 }
 0x4d0   :  { %v530_v10 = vpop.eup %529 }
 0x4d1   :  { %v356_v11 = vsel %vm237_vm2, %v530_v10, 0.0 }
 0x4d2   :  { %357 = vadd.xlane.f32.xlu1 %v356_v11 }
 0x4e3   :  { %367 = vperm.xlu1 %517, %v365_v12  }
 0x557   :  { %v384_v14 = vpop.xlane.xlu0 %383 }
 0x558   :  { %vm385_vm6 = vcmp.eq.f32.partialorder %v382_v9, %v384_v14  ;;  %v390_v28 = vcvt.f32.s32 %v384_v14 }
 0x559   :  { %v386_v16 = vsel %vm385_vm6, %v381_v15, inf }
 0x55a   :  { %387 = vmin.xlane.f32.xlu0 %v386_v16  ;;  %v391_v30 = vshll.u32 %v390_v28, 16 }
 0x55f   :  { %v358_v17 = vpop.xlane.xlu1 %357 }
 0x560   :  { %531 = vrcp.f32 %v358_v17 }
 0x561   :  { %533 = vlog2.f32 %v358_v17 }
 0x563   :  { %v368_v19 = vpop.permute.xlu1 %367 }
 0x564   :  { %vm369_vm7 = vcmp.eq.s32.totalorder %v347_v61, %v368_v19 }
 0x56a   :  { %v532_v18 = vpop.eup %531 }
 0x56b   :  { %v534_v20 = vpop.eup %533  ;;  %v360_v21 = vmul.f32 %v532_v18, %v530_v10 }
 0x56c   :  { %v363_v22 = vmul.f32 0.6931472, %v534_v20 }
 0x56d   :  { %v361_v23 = vsel %vm348_vm3, %v360_v21, 0.0 }
 0x56e   :  { %404 = vrot.lane.b32.xlu1 %v361_v23, %s638_s12  ;;  %v364_v24 = vsub.f32 %v353_v4, %v363_v22 }
 0x570   :  { %v370_v25 = vsel %vm369_vm7, %v364_v24, 0.0 }
 0x571   :  { %v371_v26 = vsel %vm237_vm2, %v370_v25, 0.0 }
 0x572   :  { %372 = vadd.xlane.f32.xlu0 %v371_v26 }
 0x588   :  { %400 = vrot.lane.b32.xlu0 %v342_v62, %s639_s1 }
 0x5e0   :  { %v405_v40 = vpop.permute.xlu1 %404 }
 0x5e7   :  { %v388_v27 = vpop.xlane.xlu0 %387 }
 0x5e8   :  { %v389_v29 = vcvt.f32.s32 %v388_v27 }
 0x5ea   :  { %v392_v32 = vadd.s32 %v391_v30, %v389_v29 }
 0x5ec   :  { %v393_v33 = vcvt.s32.f32 %v392_v32 }
 0x5ee   :  { %v397_v36 = vsel %vm396_vm9, %v393_v33, 0.0 }
 0x5ff   :  { %v373_v34 = vpop.xlane.xlu0 %372 }
 0x600   :  { %v374_v35 = vsub.f32 0.0, %v373_v34 }
 0x602   :  { %v395_v37 = vsel %vm394_vm8, %v374_v35, 0.0 }
 0x603   :  { %v398_v38 = vadd.f32 %v397_v36, %v395_v37  ;;  %v401_v39 = vpop.permute.xlu0 %400 }
 0x604   :  { %v411_v41 = vsel %vm75_vm1, %v745_v31, %v401_v39 }
 0x605   :  { %408 = vrot.lane.b32.xlu1 %v398_v38, %s640_s13  ;;  %v413_v42 = vsel %vm412_vm10, %v411_v41, %v405_v40 }
 0x677   :  { %v409_v43 = vpop.permute.xlu1 %408 }
 0x678   :  { %v415_v44 = vsel %vm414_vm11, %v413_v42, %v409_v43 }
 0x679   :  { %416 = vst [vmem:[#allocation8] sm:$0x3] %v415_v44 }
 0x67a   :  { %612 = shalt.err (!%p609_p0)
}
 0x67b   :  { %s613_s19 = scalar_lea.hbm %s783_s6, 32 }
 0x67c   :  { %p614_p1 = scmp.ne.s32.totalorder %s783_s6, %s613_s19  ;;  %p617_p2 = scmp.lt.u32.totalorder %s613_s19, %s783_s6 }
 0x67e   :  { %p619_p3 = pnand %p617_p2, %p614_p1 }
 0x680   :  { %622 = shalt.err (!%p619_p3)
}
 0x681   :  { %426 = dma.vmem_to_hbm [thread:$0]  %s424_s15, 32, %s783_s6, [#allocation4]  }
 0x682   :  { %627 = dma.done.wait [#allocation4], 32  }
 0x683   :  { %628 = vsyncadd [#allocation4], 4294967264 }
 0x684   :  { %430 = vsyncpa [#allocation3], 1 }
 0x685   :  { %431 = vsyncpa [#allocation6], 1 }
 0x686   :  { %432 = vsyncpa [#allocation4], 1 }

</bundles_post_ra>
